<compile_context>
chip_gen: v5e
topology: v5e:2x2
jax: 0.10.0
libtpu: 0.0.40
codegen_flags: <defaults>
</compile_context>

<pallas_src>
import functools

import jax
import jax.numpy as jnp
from jax import lax
from jax.experimental import pallas as pl
from jax.experimental.pallas import tpu as pltpu


def _round_up(a, b):
    return (a + b - 1) // b * b


def _vmem_limit_bytes(*buf_bytes):
    """Scoped-VMEM budget: double-buffered blocks + slack, clamped to 64 MiB
    (v7x physical; v5e/v6e have 128 MiB so this is always legal)."""
    need = 2 * sum(int(b) for b in buf_bytes) + (4 << 20)
    return int(min(max(need, 16 << 20), 64 << 20))


# --------------------------------------------------------------------------
# Kernel 1: fused QKV projection (one pass over the sequence, per batch elem)
# --------------------------------------------------------------------------
def _qkv_proj_kernel(x_ref, wq_ref, wk_ref, wv_ref, q_ref, k_ref, v_ref):
    """x_ref: (1, TR, C) bf16; w*_ref: (C, C) bf16 (scale folded into Wq);
    q/k/v_ref: (1, TR, C) bf16 outputs."""
    x_t = x_ref[0]                                                   # (TR, C)
    q_ref[0] = jnp.dot(x_t, wq_ref[...],
                       preferred_element_type=jnp.float32).astype(q_ref.dtype)
    k_ref[0] = jnp.dot(x_t, wk_ref[...],
                       preferred_element_type=jnp.float32).astype(k_ref.dtype)
    v_ref[0] = jnp.dot(x_t, wv_ref[...],
                       preferred_element_type=jnp.float32).astype(v_ref.dtype)


# --------------------------------------------------------------------------
# Kernel 2: attention (softmax(QK^T) V) + output projection
# --------------------------------------------------------------------------
def _attn_kernel(q_ref, k_ref, v_ref, wproj_ref, bproj_ref, o_ref, acc_ref,
                 *, num_heads, head_dim, n_valid):
    """One grid step == (batch element b, query tile qi).

    q_ref     : (1, TQ,   C) bf16  (softmax scale already folded in)
    k_ref     : (1, Npad, C) bf16
    v_ref     : (1, Npad, C) bf16
    wproj_ref : (C, C)       bf16  (transposed: x @ W)
    bproj_ref : (1, C)       f32
    o_ref     : (1, TQ, C)
    acc_ref   : VMEM scratch (TQ, C) f32 — pre-projection head outputs
    """
    H, D = num_heads, head_dim
    n_pad = k_ref.shape[1]

    q_t = q_ref[0]                                                   # (TQ, C)
    k_f = k_ref[0]                                                   # (Npad, C)
    v_f = v_ref[0]                                                   # (Npad, C)

    # Padded-key mask as a large finite additive bias (hoisted out of the
    # head loop).  Padded x rows are zero, so without this they would get
    # non-zero softmax weight.
    if n_pad > n_valid:
        valid = lax.broadcasted_iota(jnp.int32, (1, n_pad), 1) < n_valid
        neg_bias = jnp.where(valid, 0.0, -1e30).astype(jnp.float32)
    else:
        neg_bias = None

    # Heads in pairs: each acc store is 2*D wide (128 for ViT) -> unmasked vst.
    for h0 in range(0, H, 2):
        outs = []
        for h in range(h0, min(h0 + 2, H)):
            qh = q_t[:, h * D:(h + 1) * D]                           # (TQ, D)
            kh = k_f[:, h * D:(h + 1) * D]                           # (Npad, D)
            vh = v_f[:, h * D:(h + 1) * D]                           # (Npad, D)

            # scores = q @ k^T (scale already folded into Wq); f32 accumulate.
            s = lax.dot_general(qh, kh, (((1,), (1,)), ((), ())),
                                preferred_element_type=jnp.float32)  # (TQ, Npad)
            if neg_bias is not None:
                s = s + neg_bias

            # numerically stable softmax; denominator via EUP approx
            # reciprocal (inference-grade; use exact divide for training).
            s = s - jnp.max(s, axis=-1, keepdims=True)
            p = jnp.exp(s)
            p = p * pl.reciprocal(jnp.sum(p, axis=-1, keepdims=True),
                                  approx=True)

            outs.append(jnp.dot(p.astype(jnp.bfloat16), vh,
                                preferred_element_type=jnp.float32))  # (TQ, D)

        slab = outs[0] if len(outs) == 1 else jnp.concatenate(outs, axis=-1)
        acc_ref[:, h0 * D:h0 * D + slab.shape[-1]] = slab

    # output projection (+ bias); proj_drop(0.0) is identity.
    y = jnp.dot(acc_ref[...].astype(jnp.bfloat16), wproj_ref[...],
                preferred_element_type=jnp.float32)
    y = y + bproj_ref[...]
    o_ref[0] = y.astype(o_ref.dtype)


# --------------------------------------------------------------------------
# Wrapper
# --------------------------------------------------------------------------
def attention_forward(x, wqkv, wproj, bproj, *, num_heads, qk_scale=None,
                      tq=None):
    """Forward pass of the ViT Attention module.

    x     : (B, N, C)
    wqkv  : (3C, C)  PyTorch nn.Linear layout (out, in); qkv_bias=False
    wproj : (C, C)   PyTorch nn.Linear layout (out, in)
    bproj : (C,)
    """
    B, N, C = x.shape
    H = num_heads
    D = C // H
    scale = qk_scale if qk_scale is not None else D ** (-0.5)
    out_dtype = x.dtype

    # ---- host-side weight prep (f32 math, then bf16 for the MXU) ----------
    wq_t = (wqkv[:C].T * scale).astype(jnp.bfloat16)      # fold softmax scale
    wk_t = wqkv[C:2 * C].T.astype(jnp.bfloat16)
    wv_t = wqkv[2 * C:].T.astype(jnp.bfloat16)
    wproj_t = wproj.T.astype(jnp.bfloat16)
    bproj2 = bproj.reshape(1, C).astype(jnp.float32)

    # ---- pad N to a lane/sublane-friendly length and pick the row tile ----
    n8 = _round_up(N, 8)
    if tq is None:
        tq = 128 if n8 >= 128 else n8
        # TODO(synk): sweep tq=256 on v6e/v7x for large N (keep 128 on v5e).
    n_pad = _round_up(N, tq)
    n_tiles = n_pad // tq

    x_bf = x.astype(jnp.bfloat16)                 # host-side bf16 cast
    if n_pad != N:
        x_bf = jnp.pad(x_bf, ((0, 0), (0, n_pad - N), (0, 0)))

    # ---- kernel 1: QKV projection (K/V computed exactly once) -------------
    qkv_shape = jax.ShapeDtypeStruct((B, n_pad, C), jnp.bfloat16)
    vmem1 = _vmem_limit_bytes(tq * C * 2, 3 * C * C * 2, 3 * tq * C * 2)
    q, k, v = pl.pallas_call(
        _qkv_proj_kernel,
        out_shape=(qkv_shape, qkv_shape, qkv_shape),
        grid=(B, n_tiles),
        in_specs=[
            pl.BlockSpec((1, tq, C), lambda b, r: (b, r, 0)),   # x tile
            pl.BlockSpec((C, C), lambda b, r: (0, 0)),          # Wq (scaled)
            pl.BlockSpec((C, C), lambda b, r: (0, 0)),          # Wk
            pl.BlockSpec((C, C), lambda b, r: (0, 0)),          # Wv
        ],
        out_specs=(
            pl.BlockSpec((1, tq, C), lambda b, r: (b, r, 0)),
            pl.BlockSpec((1, tq, C), lambda b, r: (b, r, 0)),
            pl.BlockSpec((1, tq, C), lambda b, r: (b, r, 0)),
        ),
        compiler_params=pltpu.CompilerParams(
            dimension_semantics=("parallel", "parallel"),
            vmem_limit_bytes=vmem1),
    )(x_bf, wq_t, wk_t, wv_t)

    # ---- kernel 2: attention + output projection ---------------------------
    kernel = functools.partial(_attn_kernel, num_heads=H, head_dim=D,
                               n_valid=N)
    vmem2 = _vmem_limit_bytes(tq * C * 2, 2 * n_pad * C * 2, C * C * 2,
                              C * 4, tq * C * 4, tq * C * 4)
    out = pl.pallas_call(
        kernel,
        out_shape=jax.ShapeDtypeStruct((B, n_pad, C), out_dtype),
        grid=(B, n_tiles),
        in_specs=[
            pl.BlockSpec((1, tq, C), lambda b, qi: (b, qi, 0)),     # Q tile
            pl.BlockSpec((1, n_pad, C), lambda b, qi: (b, 0, 0)),   # K (full)
            pl.BlockSpec((1, n_pad, C), lambda b, qi: (b, 0, 0)),   # V (full)
            pl.BlockSpec((C, C), lambda b, qi: (0, 0)),             # Wproj^T
            pl.BlockSpec((1, C), lambda b, qi: (0, 0)),             # proj bias
        ],
        out_specs=pl.BlockSpec((1, tq, C), lambda b, qi: (b, qi, 0)),
        scratch_shapes=[pltpu.VMEM((tq, C), jnp.float32)],
        compiler_params=pltpu.CompilerParams(
            dimension_semantics=("parallel", "parallel"),
            vmem_limit_bytes=vmem2),
    )(q, k, v, wproj_t, bproj2)

    # padded query rows compute harmless values and are sliced off here.
    return out[:, :N, :]


# --------------------------------------------------------------------------
# Pure-JAX f32 reference (replica of the PyTorch module) for validation
# --------------------------------------------------------------------------
def _reference(x, wqkv, wproj, bproj, num_heads):
    B, N, C = x.shape
    D = C // num_heads
    scale = D ** (-0.5)
    qkv = jnp.einsum('bnc,oc->bno', x, wqkv).reshape(B, N, 3, num_heads, D)
    qkv = jnp.transpose(qkv, (2, 0, 3, 1, 4))
    q, k, v = qkv[0], qkv[1], qkv[2]
    attn = jnp.einsum('bhqd,bhkd->bhqk', q, k) * scale
    attn = jax.nn.softmax(attn, axis=-1)
    o = jnp.einsum('bhqk,bhkd->bhqd', attn, v)
    o = jnp.transpose(o, (0, 2, 1, 3)).reshape(B, N, C)
    return jnp.einsum('bnc,oc->bno', o, wproj) + bproj


if __name__ == "__main__":
    # Small shapes consistent with the module. N=12 deliberately non-multiple
    # of 8 to exercise the padding + key-masking path (Npad = 16).
    B, N, C = 2, 12, 32
    num_heads = 4                       # head_dim = 8

    key = jax.random.PRNGKey(0)
    kx, kqkv, kproj, kbias = jax.random.split(key, 4)

    x = jax.random.normal(kx, (B, N, C), dtype=jnp.float32)
    wqkv = jax.random.normal(kqkv, (3 * C, C), dtype=jnp.float32) * 0.05
    wproj = jax.random.normal(kproj, (C, C), dtype=jnp.float32) * 0.05
    bproj = jax.random.normal(kbias, (C,), dtype=jnp.float32) * 0.01

    out = attention_forward(x, wqkv, wproj, bproj, num_heads=num_heads)
    out = jax.block_until_ready(out)
    assert out.shape == (B, N, C)

    # Loose tolerance: kernel uses bf16 matmul operands + approx reciprocal.
    ref = _reference(x, wqkv, wproj, bproj, num_heads)
    max_err = float(jnp.max(jnp.abs(out - ref)))
    assert max_err < 5e-2, f"max abs error too large: {max_err}"

    print("KERNEL_OK")
</pallas_src>

<mosaic_0001>
module attributes {stable_mosaic.version = 11 : i64} {
  func.func @_qkv_proj_kernel(%arg0: i32, %arg1: i32, %arg2: memref<1x16x32xbf16, #tpu.memory_space<vmem>>, %arg3: memref<32x32xbf16, #tpu.memory_space<vmem>>, %arg4: memref<32x32xbf16, #tpu.memory_space<vmem>>, %arg5: memref<32x32xbf16, #tpu.memory_space<vmem>>, %arg6: memref<1x16x32xbf16, #tpu.memory_space<vmem>>, %arg7: memref<1x16x32xbf16, #tpu.memory_space<vmem>>, %arg8: memref<1x16x32xbf16, #tpu.memory_space<vmem>>) attributes {dimension_semantics = [#tpu.dimension_semantics<parallel>, #tpu.dimension_semantics<parallel>], iteration_bounds = array<i64: 2, 1>, scalar_prefetch = 0 : i64, scratch_operands = 0 : i64, tpu.core_type = #tpu.core_type<tc>, window_params = [{transform_indices = @transform_0, window_bounds = array<i64: 1, 16, 32>}, {pipeline_mode = #tpu.pipeline_mode<synchronous>, transform_indices = @transform_1, window_bounds = array<i64: 32, 32>}, {pipeline_mode = #tpu.pipeline_mode<synchronous>, transform_indices = @transform_2, window_bounds = array<i64: 32, 32>}, {pipeline_mode = #tpu.pipeline_mode<synchronous>, transform_indices = @transform_3, window_bounds = array<i64: 32, 32>}, {transform_indices = @transform_4, window_bounds = array<i64: 1, 16, 32>}, {transform_indices = @transform_5, window_bounds = array<i64: 1, 16, 32>}, {transform_indices = @transform_6, window_bounds = array<i64: 1, 16, 32>}]} {
    %c0 = arith.constant 0 : index
    %c0_0 = arith.constant 0 : index
    %c0_1 = arith.constant 0 : index
    %0 = vector.load %arg2[%c0, %c0_0, %c0_1] : memref<1x16x32xbf16, #tpu.memory_space<vmem>>, vector<1x16x32xbf16>
    %1 = vector.shape_cast %0 : vector<1x16x32xbf16> to vector<16x32xbf16>
    %c0_2 = arith.constant 0 : index
    %c0_3 = arith.constant 0 : index
    %2 = vector.load %arg3[%c0_2, %c0_3] : memref<32x32xbf16, #tpu.memory_space<vmem>>, vector<32x32xbf16>
    %cst = arith.constant dense<0.000000e+00> : vector<16x32xf32>
    %3 = tpu.matmul %1, %2, %cst {dimension_numbers = #tpu.dot_dimension_numbers<[1], [0], [0], [1], [0, 0, 1, 1], [], []>} : vector<16x32xbf16>, vector<32x32xbf16>, vector<16x32xf32> -> vector<16x32xf32>
    %4 = arith.truncf %3 : vector<16x32xf32> to vector<16x32xbf16>
    %c0_4 = arith.constant 0 : index
    %c0_5 = arith.constant 0 : index
    %c0_6 = arith.constant 0 : index
    %5 = vector.load %arg6[%c0_4, %c0_5, %c0_6] : memref<1x16x32xbf16, #tpu.memory_space<vmem>>, vector<1x16x32xbf16>
    %6 = vector.shape_cast %5 : vector<1x16x32xbf16> to vector<16x32xbf16>
    %7 = vector.shape_cast %4 : vector<16x32xbf16> to vector<1x16x32xbf16>
    tpu.vector_store %arg6[%c0_4, %c0_5, %c0_6], %7 {strides = array<i32>} : memref<1x16x32xbf16, #tpu.memory_space<vmem>>, vector<1x16x32xbf16>,
    %c0_7 = arith.constant 0 : index
    %c0_8 = arith.constant 0 : index
    %8 = vector.load %arg4[%c0_7, %c0_8] : memref<32x32xbf16, #tpu.memory_space<vmem>>, vector<32x32xbf16>
    %cst_9 = arith.constant dense<0.000000e+00> : vector<16x32xf32>
    %9 = tpu.matmul %1, %8, %cst_9 {dimension_numbers = #tpu.dot_dimension_numbers<[1], [0], [0], [1], [0, 0, 1, 1], [], []>} : vector<16x32xbf16>, vector<32x32xbf16>, vector<16x32xf32> -> vector<16x32xf32>
    %10 = arith.truncf %9 : vector<16x32xf32> to vector<16x32xbf16>
    %c0_10 = arith.constant 0 : index
    %c0_11 = arith.constant 0 : index
    %c0_12 = arith.constant 0 : index
    %11 = vector.load %arg7[%c0_10, %c0_11, %c0_12] : memref<1x16x32xbf16, #tpu.memory_space<vmem>>, vector<1x16x32xbf16>
    %12 = vector.shape_cast %11 : vector<1x16x32xbf16> to vector<16x32xbf16>
    %13 = vector.shape_cast %10 : vector<16x32xbf16> to vector<1x16x32xbf16>
    tpu.vector_store %arg7[%c0_10, %c0_11, %c0_12], %13 {strides = array<i32>} : memref<1x16x32xbf16, #tpu.memory_space<vmem>>, vector<1x16x32xbf16>,
    %c0_13 = arith.constant 0 : index
    %c0_14 = arith.constant 0 : index
    %14 = vector.load %arg5[%c0_13, %c0_14] : memref<32x32xbf16, #tpu.memory_space<vmem>>, vector<32x32xbf16>
    %cst_15 = arith.constant dense<0.000000e+00> : vector<16x32xf32>
    %15 = tpu.matmul %1, %14, %cst_15 {dimension_numbers = #tpu.dot_dimension_numbers<[1], [0], [0], [1], [0, 0, 1, 1], [], []>} : vector<16x32xbf16>, vector<32x32xbf16>, vector<16x32xf32> -> vector<16x32xf32>
    %16 = arith.truncf %15 : vector<16x32xf32> to vector<16x32xbf16>
    %c0_16 = arith.constant 0 : index
    %c0_17 = arith.constant 0 : index
    %c0_18 = arith.constant 0 : index
    %17 = vector.load %arg8[%c0_16, %c0_17, %c0_18] : memref<1x16x32xbf16, #tpu.memory_space<vmem>>, vector<1x16x32xbf16>
    %18 = vector.shape_cast %17 : vector<1x16x32xbf16> to vector<16x32xbf16>
    %19 = vector.shape_cast %16 : vector<16x32xbf16> to vector<1x16x32xbf16>
    tpu.vector_store %arg8[%c0_16, %c0_17, %c0_18], %19 {strides = array<i32>} : memref<1x16x32xbf16, #tpu.memory_space<vmem>>, vector<1x16x32xbf16>,
    return
  }
  func.func @transform_0(%arg0: i32, %arg1: i32) -> (i32, i32, i32) {
    %c0_i32 = arith.constant 0 : i32
    %c0_i32_0 = arith.constant 0 : i32
    return %arg0, %arg1, %c0_i32 : i32, i32, i32
  }
  func.func @transform_1(%arg0: i32, %arg1: i32) -> (i32, i32) {
    %c0_i32 = arith.constant 0 : i32
    %c0_i32_0 = arith.constant 0 : i32
    %c0_i32_1 = arith.constant 0 : i32
    return %c0_i32, %c0_i32_0 : i32, i32
  }
  func.func @transform_2(%arg0: i32, %arg1: i32) -> (i32, i32) {
    %c0_i32 = arith.constant 0 : i32
    %c0_i32_0 = arith.constant 0 : i32
    %c0_i32_1 = arith.constant 0 : i32
    return %c0_i32, %c0_i32_0 : i32, i32
  }
  func.func @transform_3(%arg0: i32, %arg1: i32) -> (i32, i32) {
    %c0_i32 = arith.constant 0 : i32
    %c0_i32_0 = arith.constant 0 : i32
    %c0_i32_1 = arith.constant 0 : i32
    return %c0_i32, %c0_i32_0 : i32, i32
  }
  func.func @transform_4(%arg0: i32, %arg1: i32) -> (i32, i32, i32) {
    %c0_i32 = arith.constant 0 : i32
    %c0_i32_0 = arith.constant 0 : i32
    return %arg0, %arg1, %c0_i32 : i32, i32, i32
  }
  func.func @transform_5(%arg0: i32, %arg1: i32) -> (i32, i32, i32) {
    %c0_i32 = arith.constant 0 : i32
    %c0_i32_0 = arith.constant 0 : i32
    return %arg0, %arg1, %c0_i32 : i32, i32, i32
  }
  func.func @transform_6(%arg0: i32, %arg1: i32) -> (i32, i32, i32) {
    %c0_i32 = arith.constant 0 : i32
    %c0_i32_0 = arith.constant 0 : i32
    return %arg0, %arg1, %c0_i32 : i32, i32, i32
  }
}

</mosaic_0001>

<bundles_post_ra>
// kernel: tpu_custom_call.1
= control target key start
LH: loop header
LB: loop body
LE: loop exit
PB: predicated region body
PF: predicated region fallthrough
CT: control target
= control target key end

     0   :  { %s1483_s0 = inlined_call_operand.hbm [shape: bf16[2,16,32], index: 0, kind: input, shape index: {}]   ;;  %s1484_s1 = inlined_call_operand.hbm [shape: bf16[32,32], index: 1, kind: input, shape index: {}]   ;;  %s1485_s2 = inlined_call_operand.hbm [shape: bf16[32,32], index: 2, kind: input, shape index: {}]   ;;  %s1486_s3 = inlined_call_operand.hbm [shape: bf16[32,32], index: 3, kind: input, shape index: {}]   ;;  %s1487_s4 = inlined_call_operand.hbm [shape: bf16[2,16,32], index: 4, kind: output, shape index: {0}]   ;;  %s1488_s5 = inlined_call_operand.hbm [shape: bf16[2,16,32], index: 5, kind: output, shape index: {1}]   ;;  %s1489_s6 = inlined_call_operand.hbm [shape: bf16[2,16,32], index: 6, kind: output, shape index: {2}]  }
   0x1   :  { %1494 = sst [smem:[#allocation20_spill]] %s1484_s1 }
   0x2   :  { %1495 = sst [smem:[#allocation21_spill]] %s1485_s2 }
   0x3   :  { %1496 = sst [smem:[#allocation22_spill]] %s1486_s3 }
   0x4   :  { %12 = vsyncpa [#allocation3], 0 }
   0x5   :  { %14 = vsyncpa [#allocation3 + $0x1], 0 }
   0x6   :  { %15 = vsyncpa [#allocation6], 0 }
   0x7   :  { %16 = vsyncpa [#allocation9], 0 }
   0x8   :  { %17 = vsyncpa [#allocation4], 0 }
   0x9   :  { %19 = vsyncpa [#allocation4 + $0x1], 0 }
   0xa   :  { %20 = vsyncpa [#allocation12], 0 }
   0xb   :  { %22 = vsyncpa [#allocation12 + $0x1], 0  ;;  %s1224_s21 = smov 0   ;;  %s1226_s22 = smov 0  }
   0xc   :  { %s1228_s23 = smov 0   ;;  %s1230_s24 = smov 0  }
   0xd   :  { %s1232_s25 = smov 0   ;;  %s1234_s26 = smov 0  }
   0xe LB: > { %s1255_s27 = sadd.s32 4294967295, %s1180_s26   ;;  %s1490_s28 = sadd.s32 4294967294, %s1180_s26   ;;  %s1180_s26 = sphi %s1234_s26, %s28_s26   ;;  %s1176_s25 = sphi %s1232_s25, %s1515_s25   ;;  %s1172_s24 = sphi %s1230_s24, %s1514_s24   ;;  %s1168_s23 = sphi %s1228_s23, %s1513_s23   ;;  %s1164_s22 = sphi %s1226_s22, %s1512_s22   ;;  %s1160_s21 = sphi %s1224_s21, %s1511_s21  }
   0xf   : > { %p62_p0 = scmp.ne.s32.totalorder %s1164_s22, %s1160_s21  ;;  %p63_p1 = scmp.eq.s32.totalorder %s1255_s27, 0 }
  0x10   : > { %p151_p2 = scmp.eq.s32.totalorder %s1255_s27, 1  ;;  %p157_p3 = scmp.eq.s32.totalorder %s1490_s28, 1 }
  0x11   : > { %p1266_p4 = por %p63_p1, %p62_p0  ;;  %p734_p5 = scmp.ge.s32.totalorder %s1180_s26, 1 }
  0x12   : > { %p1271_p6 = por %p157_p3, %p62_p0  ;;  %p220_p7 = scmp.lt.s32.totalorder %s1180_s26, 3 }
  0x13   : > { %s1499_s1 = sld [smem:[#allocation20_spill]]  ;;  %s1182_s11 = smov [#allocation5]  }
  0x14   : > { %p1279_p8 = pnand %p734_p5, %p220_p7  ;;  %s233_s12 = sshll.u32 %s1182_s11, 4  ;;  %s234_s12 = int_to_ptr.vmem [resolvable:$true] %s233_s12 }
  0x15   : > { %p738_p11 = scmp.ge.s32.totalorder %s1180_s26, 2  ;;  %s1502_s2 = sld [smem:[#allocation21_spill]] }
  0x16   : > { %p823_p9 = pneg %p1279_p8  ;;  %s1491_s17 = smov 64  }
  0x17   : > { %s1492_s18 = smov 4   ;;  %s1185_s19 = smov [#allocation7]  }
  0x18   : > { %p1287_p10 = pnand %p823_p9, %p63_p1  ;;  %s247_s20 = sshll.u32 %s1185_s19, 4  ;;  %s248_s20 = int_to_ptr.vmem [resolvable:$true] %s247_s20 }
  0x19   : > { %s231_s9 = sshll.u32 %s1499_s1, 4  ;;  %s1503_s3 = sld [smem:[#allocation22_spill]]  ;;  %s232_s9 = int_to_ptr.hbm [resolvable:$true] %s231_s9 }
  0x1a   : > { %826 = dma.hbm_to_vmem [thread:$0]  (!%p1287_p10), %s232_s9, 256, %s234_s12, [#allocation6], %s1491_s17, %s1491_s17, %s1492_s18  }
  0x1b   : > { %s245_s16 = sshll.u32 %s1502_s2, 4  ;;  %s1186_s14 = smov [#allocation8]   ;;  %s246_s16 = int_to_ptr.hbm [resolvable:$true] %s245_s16 }
  0x1c   : > { %829 = dma.hbm_to_vmem [thread:$0]  (!%p1287_p10), %s246_s16, 256, %s248_s20, [#allocation6], %s1491_s17, %s1491_s17, %s1492_s18  }
  0x1d   : > { %s261_s15 = sshll.u32 %s1186_s14, 4  ;;  %s40_s9 = sadd.s32 1, %s1176_s25  ;;  %s262_s15 = int_to_ptr.vmem [resolvable:$true] %s261_s15 }
  0x1e   : > { %p42_p12 = scmp.ge.s32.totalorder %s40_s9, 2  ;;  %s49_s12 = sadd.s32 1, %s1168_s23 }
  0x1f   : > { %s259_s11 = sshll.u32 %s1503_s3, 4  ;;  %p56_p13 = scmp.ne.s32.totalorder %s1168_s23, %s1164_s22  ;;  %s260_s11 = int_to_ptr.hbm [resolvable:$true] %s259_s11 }
  0x20   : > { %832 = dma.hbm_to_vmem [thread:$0]  (!%p1287_p10), %s260_s11, 256, %s262_s15, [#allocation9], %s1491_s17, %s1491_s17, %s1492_s18  }
  0x21   : > { %p57_p0 = scmp.eq.s32.totalorder %s1180_s26, 0  ;;  %s1517_s9 = smov (%p42_p12, %s40_s9), 0 }
  0x22   : > { %1504 = sst [smem:[#allocation19_spill]] %s1517_s9  ;;  %p1326_p5 = por %p151_p2, %p56_p13 }
  0x23   : > { %p1320_p3 = por %p57_p0, %p56_p13  ;;  %s44_s19 = ssub.s32 %s1176_s25, %s1517_s9 }
  0x24   : > { %p850_p7 = scmp.lt.s32.totalorder %s1180_s26, 2  ;;  %p47_p9 = scmp.eq.s32.totalorder %s44_s19, 0 }
  0x25   : > { %s275_s20 = sand.u32 1, %s1168_s23   ;;  %s792_s11 = sshll.u32 %s1176_s25, 3 }
  0x26   : > { %s739_s7 = sshll.u32 %s275_s20, 3  ;;  %s286_s28 = scalar_lea.hbm %s1483_s0, %s792_s11 }
  0x27   : > { %s1335_s8 = scalar_select %p47_p9, %s1168_s23, %s49_s12  }
  0x28   : > { %s279_s17 = scalar_lea.vmem [#allocation2], %s739_s7  ;;  %s287_s1 = sshll.u32 %s286_s28, 4  ;;  %s288_s1 = int_to_ptr.hbm [resolvable:$true] %s287_s1 }
  0x29   : > { %s289_s18 = sshll.u32 %s279_s17, 4  ;;  %p834_p2 = pnand %p850_p7, %p1320_p3  ;;  %s290_s18 = int_to_ptr.vmem [resolvable:$true] %s289_s18 }
  0x2a   : > { %s276_s2 = scalar_lea.sflag [#allocation3], %s275_s20  ;;  %s1507_s3 = smov 4  }
  0x2b   : > { %s1508_s9 = smov 64   ;;  %301 = sbr.rel (%p1279_p8) target bundleno = 226 (0xe2), region = 36 }
  0x2c   : > { %836 = dma.hbm_to_vmem [thread:$0]  (!%p834_p2), %s288_s1, 128, %s290_s18, %s276_s2, %s1508_s9, %s1508_s9, %s1507_s3  }
  0x2d   : > { %s1349_s12 = sand.u32 (!%p1279_p8), 1, %s1164_s22  }
  0x2e   : > { %s1352_s17 = sshll.u32 (!%p1279_p8), %s1349_s12, 3  ;;  %s304_s28 = scalar_lea.sflag (!%p1279_p8), [#allocation3], %s1349_s12 }
  0x2f   : > { %s307_s16 = scalar_lea.vmem (!%p1279_p8), [#allocation2], %s1352_s17 }
  0x30   : > { %1139 = dma.done.wait (%p1266_p4), %s304_s28, 128  }
  0x31   : > { %1141 = vsyncadd (%p1266_p4), %s304_s28, 4294967168 }
  0x32   : > { %1143 = dma.done.wait (%p63_p1), [#allocation6], 512  }
  0x33   : > { %1145 = vsyncadd (%p63_p1), [#allocation6], 4294966784 }
  0x34   : > { %1147 = dma.done.wait (%p63_p1), [#allocation9], 256  }
  0x35   : > { %1149 = vsyncadd (%p63_p1), [#allocation9], 4294967040  ;;  %v795_v0 = vld [vmem:[#allocation5 + $0x8] sm:$0xff]  ;;  %v797_v1 = vld [vmem:[#allocation7 + $0x8] sm:$0xff]  ;;  %vm390_vm0 = vcmask 261120   ;;  %vm410_vm1 = vcmask 257024  }
  0x36   : > { %v799_v2 = vld [vmem:[#allocation8 + $0x8] sm:$0xff]  ;;  %400 = vmatpush.bf16.msra.mxu0 %v795_v0  ;;  %435 = vmatpush.bf16.msra.mxu1 %v797_v1  ;;  %v794_v3 = vld [vmem:[#allocation5] sm:$0xff]  ;;  %v796_v4 = vld [vmem:[#allocation7] sm:$0xff]  ;;  %s800_s1 = sshll.u32 %s1172_s24, 3  ;;  %s347_s2 = scalar_lea.vmem [#allocation10], %s1352_s17 }
  0x37   : > { %469 = vmatpush.bf16.msra.mxu2 %v799_v2  ;;  %v798_v5 = vld [vmem:[#allocation8] sm:$0xff]  ;;  %v793_v6 = vld [vmem:[%s307_s16] sm:$0xff]  ;;  %s506_s3 = sshll.u32 %s347_s2, 4  ;;  %s354_s29 = scalar_lea.vmem [#allocation11], %s1352_s17  ;;  %s1380_s3 = int_to_ptr.vmem [resolvable:$true] %s506_s3 }
  0x38   : > { %s525_s10 = sshll.u32 %s354_s29, 4  ;;  %s524_s19 = scalar_lea.hbm %s1488_s5, %s800_s1  ;;  %s1382_s10 = int_to_ptr.vmem [resolvable:$true] %s525_s10 }
  0x39   : > { %s486_s20 = sand.u32 1, %s1255_s27   ;;  %s505_s14 = scalar_lea.hbm %s1487_s4, %s800_s1 }
  0x3a   : > { %401 = vmatpush.bf16.msra.mxu0 %v794_v3  ;;  %436 = vmatpush.bf16.msra.mxu1 %v796_v4  ;;  %s1384_s24 = sshll.u32 %s524_s19, 4  ;;  %s1386_s15 = sshll.u32 %s505_s14, 4  ;;  %s528_s24 = int_to_ptr.hbm [resolvable:$true] %s1384_s24  ;;  %s509_s15 = int_to_ptr.hbm [resolvable:$true] %s1386_s15 }
  0x3b   : > { %470 = vmatpush.bf16.msra.mxu2 %v798_v5  ;;  %s543_s16 = scalar_lea.hbm %s1489_s6, %s800_s1  ;;  %s1392_s18 = scalar_lea.vmem [#allocation13], %s1352_s17 }
  0x3c   : > { %s544_s9 = sshll.u32 %s1392_s18, 4  ;;  %s1401_s19 = sshll.u32 %s543_s16, 4  ;;  %s545_s9 = int_to_ptr.vmem [resolvable:$true] %s544_s9  ;;  %s547_s19 = int_to_ptr.hbm [resolvable:$true] %s1401_s19 }
  0x3d   : > { %762 = vmatmul.msk.bf16.vlgmr.msra.gmra.mxu0 %vm390_vm0, %v793_v6  ;;  %771 = vmatmul.msk.bf16.vlgmr.msra.gmra.mxu1 %vm390_vm0, %v793_v6  ;;  %s1403_s7 = scalar_lea.sflag [#allocation12], %s486_s20  ;;  %s1044_s11 = sshra.s32 %s528_s24, 4  ;;  %s1045_s11 = int_to_ptr.hbm [resolvable:$true] %s1044_s11 }
  0x3e   : > { %780 = vmatmul.msk.bf16.vlgmr.msra.gmra.mxu2 %vm390_vm0, %v793_v6  ;;  %s1046_s1 = scalar_lea.hbm %s1045_s11, 8  ;;  %s1050_s27 = scalar_lea.hbm %s1488_s5, 16 }
  0x3f   : > { %p1047_p1 = scmp.ne.s32.totalorder %s1045_s11, %s1046_s1  ;;  %p1051_p10 = scmp.lt.s32.totalorder %s1045_s11, %s1488_s5 }
  0x40   : > { %p1052_p12 = scmp.lt.s32.totalorder %s1050_s27, %s1046_s1 }
  0x41   : > { %p1048_p4 = pnand %p1047_p1, %p1326_p5 }
  0x42   : > { %p1053_p13 = por %p1052_p12, %p1051_p10 }
  0x43   : > { %p1049_p8 = pneg %p1048_p4 }
  0x45   : > { %p1054_p0 = pnand %p1053_p13, %p1049_p8 }
  0xba   : > { %v403_v7 = vpop.f32.mrf.mxu0  ;;  %v438_v8 = vpop.f32.mrf.mxu1 }
  0xbb   : > { %v408_v9 = vpack.c.bf16 %v403_v7, %v403_v7  ;;  %v443_v10 = vpack.c.bf16 %v438_v8, %v438_v8 }
  0xbd   : > { %411 = vst.msk [vmem:[%s347_s2] sm:$0xf] %vm410_vm1, %v408_v9 }
  0xbe   : > { %445 = vst.msk [vmem:[%s354_s29] sm:$0xf] %vm410_vm1, %v443_v10 }
  0xc1   : > { %v472_v11 = vpop.f32.mrf.mxu2 }
  0xc2   : > { %v477_v12 = vpack.c.bf16 %v472_v11, %v472_v11  ;;  %v405_v13 = vpop.f32.mrf.mxu0  ;;  %v440_v14 = vpop.f32.mrf.mxu1 }
  0xc3   : > { %v409_v15 = vpack.c.bf16 %v405_v13, %v405_v13  ;;  %v444_v16 = vpack.c.bf16 %v440_v14, %v440_v14 }
  0xc4   : > { %479 = vst.msk [vmem:[%s1392_s18] sm:$0xf] %vm410_vm1, %v477_v12 }
  0xc5   : > { %412 = vst.msk [vmem:[%s347_s2 + $0x4] sm:$0xf] %vm410_vm1, %v409_v15 }
  0xc6   : > { %446 = vst.msk [vmem:[%s354_s29 + $0x4] sm:$0xf] %vm410_vm1, %v444_v16 }
  0xc7   : > { %1057 = shalt.err (!%p1054_p0)
}
  0xc8   : > { %s1187_s29 = smov 64   ;;  %s1188_s20 = smov 4  }
  0xc9   : > { %818 = dma.vmem_to_hbm [thread:$0]  (%p1326_p5), %s1382_s10, 128, %s528_s24, %s1403_s7, %s1187_s29, %s1187_s29, %s1188_s20  }
  0xca   : > { %s482_s16 = scalar_lea.sflag [#allocation4], %s1349_s12  ;;  %s1072_s11 = sshra.s32 %s509_s15, 4  ;;  %s1073_s11 = int_to_ptr.hbm [resolvable:$true] %s1072_s11 }
  0xcb   : > { %s1074_s1 = scalar_lea.hbm %s1073_s11, 8  ;;  %s1078_s27 = scalar_lea.hbm %s1487_s4, 16 }
  0xcc   : > { %p1075_p3 = scmp.ne.s32.totalorder %s1073_s11, %s1074_s1  ;;  %p1079_p2 = scmp.lt.s32.totalorder %s1073_s11, %s1487_s4 }
  0xcd   : > { %p1080_p1 = scmp.lt.s32.totalorder %s1078_s27, %s1074_s1 }
  0xce   : > { %p1076_p7 = pnand %p1075_p3, %p1326_p5 }
  0xcf   : > { %p1081_p4 = por %p1080_p1, %p1079_p2 }
  0xd0   : > { %p1077_p9 = pneg %p1076_p7 }
  0xd2   : > { %p1082_p8 = pnand %p1081_p4, %p1077_p9 }
  0xd4   : > { %1085 = shalt.err (!%p1082_p8)
}
  0xd5   : > { %817 = dma.vmem_to_hbm [thread:$0]  (%p1326_p5), %s1380_s3, 128, %s509_s15, %s482_s16, %s1187_s29, %s1187_s29, %s1188_s20   ;;  %v474_v17 = vpop.f32.mrf.mxu2 }
  0xd6   : > { %v478_v18 = vpack.c.bf16 %v474_v17, %v474_v17  ;;  %s1100_s12 = sshra.s32 %s547_s19, 4  ;;  %s1106_s1 = scalar_lea.hbm %s1489_s6, 16  ;;  %s1101_s12 = int_to_ptr.hbm [resolvable:$true] %s1100_s12 }
  0xd7   : > { %s1102_s10 = scalar_lea.hbm %s1101_s12, 8  ;;  %p1107_p0 = scmp.lt.s32.totalorder %s1101_s12, %s1489_s6 }
  0xd8   : > { %480 = vst.msk [vmem:[%s1392_s18 + $0x4] sm:$0xf] %vm410_vm1, %v478_v18  ;;  %p1103_p10 = scmp.ne.s32.totalorder %s1101_s12, %s1102_s10  ;;  %p1108_p3 = scmp.lt.s32.totalorder %s1106_s1, %s1102_s10 }
  0xda   : > { %p1104_p12 = pnand %p1103_p10, %p1326_p5  ;;  %p1109_p7 = por %p1108_p3, %p1107_p0 }
  0xdc   : > { %p1105_p13 = pneg %p1104_p12 }
  0xde   : > { %p1110_p9 = pnand %p1109_p7, %p1105_p13 }
  0xe0   : > { %1113 = shalt.err (!%p1110_p9)
}
  0xe1   : > { %819 = dma.vmem_to_hbm [thread:$0]  (%p1326_p5), %s545_s9, 128, %s547_s19, %s1403_s7, %s1187_s29, %s1187_s29, %s1188_s20  }
  0xe2 PF: > { %s561_s15 = sand.u32 1, %s1160_s21   ;;  %p838_p2 = pnand %p738_p11, %p1271_p6 }
  0xe3   : > { %s562_s18 = scalar_lea.sflag [#allocation4], %s561_s15 }
  0xe4   : > { %p839_p1 = pneg %p838_p2 }
  0xe6   : > { %1151 = dma.done.wait (%p839_p1), %s562_s18, 128  }
  0xe7   : > { %1153 = vsyncadd (%p839_p1), %s562_s18, 4294967168  ;;  %s1509_s16 = sadd.s32 4294967294, %s1180_s26  }
  0xe8   : > { %s571_s13 = sand.u32 1, %s1509_s16  }
  0xe9   : > { %s572_s14 = scalar_lea.sflag [#allocation12], %s571_s13 }
  0xea   : > { %1155 = dma.done.wait (%p839_p1), %s572_s14, 256  }
  0xeb   : > { %1157 = vsyncadd (%p839_p1), %s572_s14, 4294967040  ;;  %s28_s26 = sadd.s32 1, %s1180_s26   ;;  %s1510_s30 = sld [smem:[#allocation19_spill]] }
  0xec   : > { %p25_p5 = scmp.ge.s32.totalorder %s28_s26, 4   ;;  %s1511_s21 = smov %s1164_s22 }
  0xed   : > { %s1512_s22 = smov %s1168_s23  ;;  %s1513_s23 = smov %s1335_s8 }
  0xee   : > { %s1514_s24 = smov %s1176_s25  ;;  %27 = sbr.rel (!%p25_p5) target bundleno = 14 (0xe), region = 125 }
  0xf1   : > { %s1515_s25 = smov %s1510_s30 }
  0xf3   :  { %588 = vsyncpa [#allocation3], 1 }
  0xf4   :  { %590 = vsyncpa [#allocation3 + $0x1], 1 }
  0xf5   :  { %591 = vsyncpa [#allocation6], 1 }
  0xf6   :  { %592 = vsyncpa [#allocation9], 1 }
  0xf7   :  { %593 = vsyncpa [#allocation4], 1 }
  0xf8   :  { %595 = vsyncpa [#allocation4 + $0x1], 1 }
  0xf9   :  { %596 = vsyncpa [#allocation12], 1 }
  0xfa   :  { %598 = vsyncpa [#allocation12 + $0x1], 1 }

</bundles_post_ra>
